<compile_context>
chip_gen: v5e
topology: v5e:2x2
jax: 0.10.0
libtpu: 0.0.40
codegen_flags: <defaults>
</compile_context>

<pallas_src>
import functools

import jax
import jax.numpy as jnp
from jax import lax
from jax.experimental import pallas as pl
from jax.experimental.pallas import tpu as pltpu

_LANE = 128      # lane width (last-dim tiling)
_SUBLANE = 8     # f32 sublane width (second-to-last-dim tiling)
_NEG = -1e30     # "minus infinity" bias for padded class columns


def _round_up(x, m):
    return (x + m - 1) // m * m


# ----------------------------------------------------------------------------
# Kernels
# ----------------------------------------------------------------------------
def _linear_argmax_kernel(x_ref, w_ref, b_ref, out_ref):
    """logits = x @ W + b ; out = argmax(logits, axis=1) broadcast across lanes."""
    logits = (
        jnp.dot(x_ref[...], w_ref[...], preferred_element_type=jnp.float32)
        + b_ref[...]
    )
    # first-occurrence argmax over the (lane-padded) class axis
    max_val = jnp.max(logits, axis=1, keepdims=True)
    class_ids = lax.broadcasted_iota(jnp.int32, logits.shape, 1)
    cand = jnp.where(logits == max_val, class_ids, jnp.iinfo(jnp.int32).max)
    amax = jnp.min(cand, axis=1, keepdims=True)                 # (tile_b, 1)
    # lane-dense (unmasked) store; the wrapper slices lane 0.
    out_ref[...] = jnp.broadcast_to(amax, out_ref.shape)


def _linear_ce_kernel(x_ref, w_ref, b_ref, y_ref, loss_ref, *, batch):
    """Accumulate sum_i(logsumexp(logits_i) - logits_i[y_i]) across batch tiles;
    divide by the true batch size at the last grid step."""
    pid = pl.program_id(0)
    tile_b = x_ref.shape[0]

    @pl.when(pid == 0)
    def _init():
        loss_ref[...] = jnp.zeros_like(loss_ref)

    logits = (
        jnp.dot(x_ref[...], w_ref[...], preferred_element_type=jnp.float32)
        + b_ref[...]
    )
    # numerically-stable logsumexp per row; padded classes sit at -1e30 -> exp == 0
    m = jnp.max(logits, axis=1, keepdims=True)
    lse = m + jnp.log(jnp.sum(jnp.exp(logits - m), axis=1, keepdims=True))
    # true-class logit via a one-hot mask (y_ref is (tile_b, 1) int32)
    class_ids = lax.broadcasted_iota(jnp.int32, logits.shape, 1)
    onehot = (class_ids == y_ref[...]).astype(jnp.float32)
    true_logit = jnp.sum(logits * onehot, axis=1, keepdims=True)
    # mask batch-padding rows so they never contribute to the mean
    row_ids = pid * tile_b + lax.broadcasted_iota(jnp.int32, (tile_b, 1), 0)
    valid = (row_ids < batch).astype(jnp.float32)
    tile_sum = jnp.sum(valid * (lse - true_logit))              # rank-0

    loss_ref[...] = loss_ref[...] + tile_sum                    # broadcast over lanes

    @pl.when(pid == pl.num_programs(0) - 1)
    def _finalize():
        loss_ref[...] = loss_ref[...] * (1.0 / batch)


# ----------------------------------------------------------------------------
# Wrapper
# ----------------------------------------------------------------------------
def classification_model_forward(x, w, b, y=None, *, tile_b=None):
    """x: (B, in_size) f32, w: (in_size, out_size) f32, b: (out_size,) f32,
    y: optional (B,) integer class labels.

    Returns (B, 1) int32 argmax if y is None, else scalar f32 mean cross-entropy.
    """
    B, K = x.shape
    N = w.shape[1]

    k_pad = _round_up(K, _SUBLANE)
    n_pad = _round_up(N, _LANE)
    if tile_b is None:
        # 256 rows x 128 lanes f32 logits = 128 KiB/tile: enough to amortize the
        # ~0.35 us/step overhead, small enough (double-buffered) for every
        # generation's scoped VMEM, including v7x's tighter budget.
        tile_b = min(256, _round_up(B, _SUBLANE))
    b_pad = _round_up(B, tile_b)
    num_tiles = b_pad // tile_b

    # zero-pad activations / weights; padded class columns get a -1e30 bias.
    x_p = jnp.pad(x.astype(jnp.float32), ((0, b_pad - B), (0, k_pad - K)))
    w_p = jnp.pad(w.astype(jnp.float32), ((0, k_pad - K), (0, n_pad - N)))
    b_p = jnp.pad(b.astype(jnp.float32).reshape(1, N), ((0, 0), (0, n_pad - N)),
                  constant_values=_NEG)

    x_spec = pl.BlockSpec((tile_b, k_pad), lambda i: (i, 0))
    w_spec = pl.BlockSpec((k_pad, n_pad), lambda i: (0, 0))     # resident
    b_spec = pl.BlockSpec((1, n_pad), lambda i: (0, 0))         # resident

    matmul_flops = 2 * b_pad * k_pad * n_pad
    in_bytes = (x_p.size + w_p.size + b_p.size) * 4

    if y is None:
        out = pl.pallas_call(
            _linear_argmax_kernel,
            out_shape=jax.ShapeDtypeStruct((b_pad, _LANE), jnp.int32),
            grid_spec=pltpu.PrefetchScalarGridSpec(
                num_scalar_prefetch=0,
                grid=(num_tiles,),
                in_specs=[x_spec, w_spec, b_spec],
                out_specs=pl.BlockSpec((tile_b, _LANE), lambda i: (i, 0)),
            ),
            compiler_params=pltpu.CompilerParams(
                dimension_semantics=("parallel",)),
            cost_estimate=pl.CostEstimate(
                flops=matmul_flops + 4 * b_pad * n_pad,
                transcendentals=0,
                bytes_accessed=in_bytes + b_pad * _LANE * 4),
        )(x_p, w_p, b_p)
        return out[:B, 0:1]                                     # (B, 1) int32

    y_p = jnp.pad(y.astype(jnp.int32).reshape(B, 1), ((0, b_pad - B), (0, 0)))
    y_spec = pl.BlockSpec((tile_b, 1), lambda i: (i, 0))

    loss = pl.pallas_call(
        functools.partial(_linear_ce_kernel, batch=B),
        out_shape=jax.ShapeDtypeStruct((1, _LANE), jnp.float32),
        grid_spec=pltpu.PrefetchScalarGridSpec(
            num_scalar_prefetch=0,
            grid=(num_tiles,),
            in_specs=[x_spec, w_spec, b_spec, y_spec],
            out_specs=pl.BlockSpec((1, _LANE), lambda i: (0, 0)),  # accumulator
        ),
        compiler_params=pltpu.CompilerParams(
            dimension_semantics=("arbitrary",)),   # batch axis is a reduction here
        cost_estimate=pl.CostEstimate(
            flops=matmul_flops + 8 * b_pad * n_pad,
            transcendentals=b_pad * n_pad + b_pad,
            bytes_accessed=in_bytes + y_p.size * 4 + _LANE * 4),
    )(x_p, w_p, b_p, y_p)
    return loss[0, 0]


# ----------------------------------------------------------------------------
# Main
# ----------------------------------------------------------------------------
if __name__ == "__main__":
    # Small shapes consistent with the module: batch=8, in_size=32, 5 classes.
    B, IN_SIZE, OUT_SIZE = 8, 32, 5

    key = jax.random.PRNGKey(0)
    k_x, k_w, k_b, k_y = jax.random.split(key, 4)

    # Deterministic "PyTorch-style" Linear init: U(-1/sqrt(in), 1/sqrt(in)).
    bound = 1.0 / (IN_SIZE ** 0.5)
    w = jax.random.uniform(
        k_w, (IN_SIZE, OUT_SIZE), jnp.float32, minval=-bound, maxval=bound
    )
    b = jax.random.uniform(
        k_b, (OUT_SIZE,), jnp.float32, minval=-bound, maxval=bound
    )

    x = jax.random.normal(k_x, (B, IN_SIZE), jnp.float32)
    y = jax.random.randint(k_y, (B,), 0, OUT_SIZE, jnp.int32)

    # Inference path: argmax over classes, keepdim=True -> (B, 1)
    preds = jax.block_until_ready(classification_model_forward(x, w, b))

    # Training path: mean cross-entropy loss -> scalar
    loss = jax.block_until_ready(classification_model_forward(x, w, b, y))

    # Sanity check against a plain-JAX reference.
    logits_ref = x @ w + b
    preds_ref = jnp.argmax(logits_ref, axis=1, keepdims=True).astype(jnp.int32)
    lse_ref = jax.nn.logsumexp(logits_ref, axis=1)
    loss_ref = jnp.mean(lse_ref - logits_ref[jnp.arange(B), y])

    assert preds.shape == (B, 1) and preds.dtype == jnp.int32
    assert bool(jnp.all(preds == preds_ref))
    assert abs(float(loss) - float(loss_ref)) < 1e-5

    print("KERNEL_OK")
</pallas_src>

<mosaic_0001>
module attributes {stable_mosaic.version = 11 : i64} {
  func.func @_linear_argmax_kernel(%arg0: i32, %arg1: memref<8x32xf32, #tpu.memory_space<vmem>>, %arg2: memref<32x128xf32, #tpu.memory_space<vmem>>, %arg3: memref<1x128xf32, #tpu.memory_space<vmem>>, %arg4: memref<8x128xi32, #tpu.memory_space<vmem>>) attributes {dimension_semantics = [#tpu.dimension_semantics<parallel>], iteration_bounds = array<i64: 1>, scalar_prefetch = 0 : i64, scratch_operands = 0 : i64, tpu.core_type = #tpu.core_type<tc>, window_params = [{transform_indices = @transform_0, window_bounds = array<i64: 8, 32>}, {pipeline_mode = #tpu.pipeline_mode<synchronous>, transform_indices = @transform_1, window_bounds = array<i64: 32, 128>}, {pipeline_mode = #tpu.pipeline_mode<synchronous>, transform_indices = @transform_2, window_bounds = array<i64: 1, 128>}, {transform_indices = @transform_3, window_bounds = array<i64: 8, 128>}]} {
    %c0 = arith.constant 0 : index
    %c0_0 = arith.constant 0 : index
    %0 = vector.load %arg1[%c0, %c0_0] : memref<8x32xf32, #tpu.memory_space<vmem>>, vector<8x32xf32>
    %c0_1 = arith.constant 0 : index
    %c0_2 = arith.constant 0 : index
    %1 = vector.load %arg2[%c0_1, %c0_2] : memref<32x128xf32, #tpu.memory_space<vmem>>, vector<32x128xf32>
    %cst = arith.constant dense<0.000000e+00> : vector<8x128xf32>
    %2 = tpu.matmul %0, %1, %cst {dimension_numbers = #tpu.dot_dimension_numbers<[1], [0], [0], [1], [0, 0, 1, 1], [], []>} : vector<8x32xf32>, vector<32x128xf32>, vector<8x128xf32> -> vector<8x128xf32>
    %c0_3 = arith.constant 0 : index
    %c0_4 = arith.constant 0 : index
    %3 = vector.load %arg3[%c0_3, %c0_4] : memref<1x128xf32, #tpu.memory_space<vmem>>, vector<1x128xf32>
    %4 = vector.broadcast %3 : vector<1x128xf32> to vector<8x128xf32>
    %5 = arith.addf %2, %4 : vector<8x128xf32>
    %cst_5 = arith.constant dense<0xFF800000> : vector<8xf32>
    %6 = vector.multi_reduction <maximumf>, %5, %cst_5 [1] : vector<8x128xf32> to vector<8xf32>
    %7 = vector.shape_cast %6 : vector<8xf32> to vector<8x1xf32>
    %8 = tpu.iota {dimensions = array<i32: 1>} : vector<8x128xi32>
    %9 = vector.broadcast %7 : vector<8x1xf32> to vector<8x128xf32>
    %10 = arith.cmpf oeq, %5, %9 : vector<8x128xf32>
    %c2147483647_i32 = arith.constant 2147483647 : i32
    %11 = vector.broadcast %c2147483647_i32 : i32 to vector<8x128xi32>
    %12 = arith.select %10, %8, %11 : vector<8x128xi1>, vector<8x128xi32>
    %cst_6 = arith.constant dense<2147483647> : vector<8xi32>
    %13 = vector.multi_reduction <minsi>, %12, %cst_6 [1] : vector<8x128xi32> to vector<8xi32>
    %14 = vector.shape_cast %13 : vector<8xi32> to vector<8x1xi32>
    %15 = vector.shape_cast %14 : vector<8x1xi32> to vector<8x1xi32>
    %16 = vector.broadcast %15 : vector<8x1xi32> to vector<8x128xi32>
    %c0_7 = arith.constant 0 : index
    %c0_8 = arith.constant 0 : index
    %17 = vector.load %arg4[%c0_7, %c0_8] : memref<8x128xi32, #tpu.memory_space<vmem>>, vector<8x128xi32>
    tpu.vector_store %arg4[%c0_7, %c0_8], %16 {strides = array<i32>} : memref<8x128xi32, #tpu.memory_space<vmem>>, vector<8x128xi32>,
    return
  }
  func.func @transform_0(%arg0: i32) -> (i32, i32) {
    %c0_i32 = arith.constant 0 : i32
    %c0_i32_0 = arith.constant 0 : i32
    return %arg0, %c0_i32 : i32, i32
  }
  func.func @transform_1(%arg0: i32) -> (i32, i32) {
    %c0_i32 = arith.constant 0 : i32
    %c0_i32_0 = arith.constant 0 : i32
    %c0_i32_1 = arith.constant 0 : i32
    return %c0_i32, %c0_i32_0 : i32, i32
  }
  func.func @transform_2(%arg0: i32) -> (i32, i32) {
    %c0_i32 = arith.constant 0 : i32
    %c0_i32_0 = arith.constant 0 : i32
    %c0_i32_1 = arith.constant 0 : i32
    return %c0_i32, %c0_i32_0 : i32, i32
  }
  func.func @transform_3(%arg0: i32) -> (i32, i32) {
    %c0_i32 = arith.constant 0 : i32
    %c0_i32_0 = arith.constant 0 : i32
    return %arg0, %c0_i32 : i32, i32
  }
}

</mosaic_0001>

<bundles_post_ra>
// kernel: tpu_custom_call.1
= control target key start
LH: loop header
LB: loop body
LE: loop exit
PB: predicated region body
PF: predicated region fallthrough
CT: control target
= control target key end

     0   :  { %8 = vsyncpa [#allocation3], 0  ;;  %s239_s0 = inlined_call_operand.hbm [shape: f32[8,32], index: 0, kind: input, shape index: {}]   ;;  %s240_s1 = inlined_call_operand.hbm [shape: f32[32,128], index: 1, kind: input, shape index: {}]   ;;  %s241_s2 = inlined_call_operand.vmem [shape: f32[1,128], index: 2, kind: input, shape index: {}]   ;;  %s242_s3 = inlined_call_operand.hbm [shape: s32[8,128], index: 3, kind: output, shape index: {}]  }
   0x1   :  { %9 = vsyncpa [#allocation6], 0 }
   0x2   :  { %10 = vsyncpa [#allocation4], 0  ;;  %s16_s14 = sshll.u32 %s239_s0, 4  ;;  %s202_s15 = smov [#allocation2]   ;;  %s17_s14 = int_to_ptr.hbm [resolvable:$true] %s16_s14 }
   0x3   :  { %s18_s16 = sshll.u32 %s202_s15, 4  ;;  %s26_s19 = sshll.u32 %s240_s1, 4  ;;  %s19_s16 = int_to_ptr.vmem [resolvable:$true] %s18_s16  ;;  %s27_s19 = int_to_ptr.hbm [resolvable:$true] %s26_s19 }
   0x4   :  { %21 = dma.hbm_to_vmem [thread:$0]  %s17_s14, 128, %s19_s16, [#allocation3]  }
   0x5   :  { %s203_s20 = smov [#allocation5]   ;;  %s204_s22 = smov 128  }
   0x6   :  { %s28_s21 = sshll.u32 %s203_s20, 4  ;;  %s205_s23 = smov 8   ;;  %s29_s21 = int_to_ptr.vmem [resolvable:$true] %s28_s21 }
   0x7   :  { %34 = dma.hbm_to_vmem [thread:$0]  %s27_s19, 512, %s29_s21, [#allocation6], %s204_s22, %s204_s22, %s205_s23  }
   0x8   :  { %196 = dma.done.wait [#allocation3], 128  }
   0x9   :  { %197 = vsyncadd [#allocation3], 4294967168 }
   0xa   :  { %198 = dma.done.wait [#allocation6], 512  }
   0xb   :  { %199 = vsyncadd [#allocation6], 4294966784  ;;  %v49_v0 = vld [vmem:[#allocation5 + $0x18] sm:$0xff]  ;;  %v48_v1 = vld [vmem:[#allocation5 + $0x10] sm:$0xff]  ;;  %vm54_vm0 = vcmask 261120   ;;  %v80_v8 = vlaneseq  ;;  %s106_s27 = sshll.u32 %s242_s3, 4  ;;  %s107_s27 = int_to_ptr.hbm [resolvable:$true] %s106_s27 }
   0xc   :  { %70 = vmatpush.msra.mxu0 %v49_v0  ;;  %v47_v2 = vld [vmem:[#allocation5 + $0x8] sm:$0xff]  ;;  %v46_v3 = vld [vmem:[#allocation5] sm:$0xff]  ;;  %v45_v4 = vld [vmem:[#allocation2] sm:$0xff] }
   0xd   :  { %v123_v5 = vld [vmem:[%s241_s2] ss:$0 sm:$0xff]  ;;  %v81_v9 = vand.u32 127, %v80_v8  ;;  %s206_s2 = smov [#allocation7]  }
   0xe   :  { %71 = vmatpush.msra.mxu0 %v48_v1  ;;  %s104_s24 = sshll.u32 %s206_s2, 4  ;;  %s105_s24 = int_to_ptr.vmem [resolvable:$true] %s104_s24 }
  0x10   :  { %72 = vmatpush.msra.mxu0 %v47_v2 }
  0x12   :  { %73 = vmatpush.msra.mxu0 %v46_v3 }
  0x13   :  { %117 = vmatmul.msk.f32.vlgmr.msra.gmra.mxu0 %vm54_vm0, %v45_v4 }
  0x90   :  { %v75_v6 = vpop.f32.mrf.mxu0 }
  0x91   :  { %v76_v7 = vadd.f32 %v123_v5, %v75_v6 }
  0x93   :  { %78 = vmax.xlane.f32.xlu0 %v76_v7 }
 0x106   :  { %v79_v10 = vpop.xlane.xlu0 %78 }
 0x107   :  { %vm82_vm1 = vcmp.eq.f32.partialorder %v76_v7, %v79_v10 }
 0x108   :  { %v83_v11 = vsel %vm82_vm1, %v81_v9, 2147483647 }
 0x109   :  { %v85_v12 = vshra.s32 %v83_v11, 16  ;;  %v84_v14 = vand.u32 65535, %v83_v11 }
 0x10b   :  { %v87_v13 = vcvt.s32.f32 %v85_v12  ;;  %v86_v16 = vcvt.s32.f32 %v84_v14 }
 0x10d   :  { %88 = vmin.xlane.f32.xlu0 %v87_v13 }
 0x180   :  { %v89_v15 = vpop.xlane.xlu0 %88 }
 0x181   :  { %vm90_vm2 = vcmp.eq.f32.partialorder %v87_v13, %v89_v15  ;;  %v95_v18 = vcvt.f32.s32 %v89_v15 }
 0x182   :  { %v91_v17 = vsel %vm90_vm2, %v86_v16, inf }
 0x183   :  { %92 = vmin.xlane.f32.xlu1 %v91_v17  ;;  %v96_v20 = vshll.u32 %v95_v18, 16 }
 0x1f6   :  { %v93_v19 = vpop.xlane.xlu1 %92 }
 0x1f7   :  { %v94_v21 = vcvt.f32.s32 %v93_v19 }
 0x1f9   :  { %v97_v22 = vadd.s32 %v96_v20, %v94_v21 }
 0x1fb   :  { %98 = vst [vmem:[#allocation7] sm:$0xff] %v97_v22 }
 0x1fc   :  { %109 = dma.vmem_to_hbm [thread:$0]  %s105_s24, 128, %s107_s27, [#allocation4]  }
 0x1fd   :  { %200 = dma.done.wait [#allocation4], 128  }
 0x1fe   :  { %201 = vsyncadd [#allocation4], 4294967168 }
 0x1ff   :  { %114 = vsyncpa [#allocation3], 1 }
 0x200   :  { %115 = vsyncpa [#allocation6], 1 }
 0x201   :  { %116 = vsyncpa [#allocation4], 1 }

</bundles_post_ra>
